<compile_context>
chip_gen: v7x
topology: tpu7x:2x2x1
jax: 0.10.0
libtpu: 0.0.40
codegen_flags: <defaults>
</compile_context>

<pallas_src>
import functools

import jax
import jax.numpy as jnp
from jax.experimental import pallas as pl
from jax.experimental.pallas import tpu as pltpu


def _contract_kernel(x_ref, o_ref, *, gain, C):
    # x_ref: (1, TH, gain, Wo, gain*C)   lane index j = s2*C + c
    # o_ref: (1, TH, Wo, gain*gain*C)    lane index   = (s1*gain + s2)*C + c
    # Direct per-s1 slice stores at static, 128-aligned lane offsets
    # (no concat, no XLU work).  The astype fuses an optional output cast.
    sC = gain * C
    for s1 in range(gain):
        o_ref[:, :, :, s1 * sC:(s1 + 1) * sC] = (
            x_ref[:, :, s1, :, :].astype(o_ref.dtype))


def _ceil_to(x, m):
    return ((x + m - 1) // m) * m


def _vmem_capacity_bytes():
    """Physical VMEM of the local TPU; conservative fallback if unavailable."""
    try:
        return int(pltpu.get_tpu_info().vmem_capacity_bytes)
    except Exception:
        return 128 * 1024 * 1024  # v5e/v6e physical VMEM


def _choose_row_tile(N, Ho, Wo, s, C, in_isz, out_isz, budget, want_even_steps):
    """Largest row tile TH whose live (in+out) blocks fit `budget` bytes.

    The grid row extent is pl.cdiv(Ho, TH); a ragged last tile is allowed
    (Pallas masks its writeback), so awkward Ho values keep big tiles.
    On v7x-like chips (want_even_steps) the total step count is kept >= 2 and
    even so both TensorCores get balanced work.
    """
    # dtype-aware sublane padding: 8 rows (f32), 16 (bf16), 32 (int8/fp8)
    wo_pad_in = _ceil_to(Wo, max(8, 32 // in_isz))
    wo_pad_out = _ceil_to(Wo, max(8, 32 // out_isz))
    in_row = s * wo_pad_in * _ceil_to(s * C, 128) * in_isz      # bytes / output row
    out_row = wo_pad_out * _ceil_to(s * s * C, 128) * out_isz
    max_rows = max(1, budget // (in_row + out_row))
    max_rows = min(max_rows, Ho)

    tiles = -(-Ho // max_rows)                  # minimum row tiles under budget
    if N * tiles < 2 and Ho > 1:
        tiles = 2                               # keep the software pipeline busy
    tiles = min(tiles, Ho)
    th = -(-Ho // tiles)                        # th <= max_rows by construction

    if want_even_steps:
        # Shrink TH (never grows past the budget) until N * n_row_tiles is even.
        while th > 1 and (N * (-(-Ho // th))) % 2 != 0:
            th -= 1
    return max(1, th)


def contract_nhwc(x, gain=2, *, out_dtype=None, row_tile=None, force_pallas=False):
    """Contract / space-to-depth in NHWC layout.

    x: (N, H, W, C) -> (N, H//gain, W//gain, gain*gain*C), equal to the PyTorch
    Contract output transposed to channels-last.  `out_dtype` optionally fuses
    an output cast (e.g. bf16) into the store.
    """
    N, H, W, C = x.shape
    s = gain
    assert H % s == 0 and W % s == 0, "H and W must be divisible by gain"
    Ho, Wo = H // s, W // s
    out_dtype = x.dtype if out_dtype is None else jnp.dtype(out_dtype)

    # Lane-sparse / unaligned channel counts: a per-s1 store at a non-128 lane
    # offset means XLU rotates + masked vst.msk, so emit the XLA
    # reshape+transpose and let it fuse with the neighbouring op instead.
    if not force_pallas and (s * C) % 128 != 0:
        x6 = x.reshape(N, Ho, s, Wo, s, C)
        out = jnp.transpose(x6, (0, 1, 3, 2, 4, 5)).reshape(N, Ho, Wo, s * s * C)
        return out.astype(out_dtype)

    # Free row-major view: x5[n, ho, s1, wo, s2*C + c] == x[n, ho*s+s1, wo*s+s2, c]
    x5 = x.reshape(N, Ho, s, Wo, s * C)

    in_isz = jnp.dtype(x.dtype).itemsize
    out_isz = jnp.dtype(out_dtype).itemsize

    vmem = _vmem_capacity_bytes()
    budget = vmem // 4                               # live (in+out) bytes / step
    want_even_steps = vmem <= 64 * 1024 * 1024       # v7x-like: 2 TCs, small VMEM
    if row_tile is not None:
        TH = max(1, min(int(row_tile), Ho))
    else:
        TH = _choose_row_tile(N, Ho, Wo, s, C, in_isz, out_isz, budget,
                              want_even_steps)
    grid = (N, pl.cdiv(Ho, TH))                      # ragged last row tile is masked

    # Double-buffered blocks + headroom, capped at physical VMEM.
    vmem_limit = int(min(vmem, 2 * budget + 4 * 1024 * 1024))

    return pl.pallas_call(
        functools.partial(_contract_kernel, gain=s, C=C),
        out_shape=jax.ShapeDtypeStruct((N, Ho, Wo, s * s * C), out_dtype),
        grid=grid,
        in_specs=[
            pl.BlockSpec((1, TH, s, Wo, s * C), lambda n, i: (n, i, 0, 0, 0)),
        ],
        out_specs=pl.BlockSpec((1, TH, Wo, s * s * C), lambda n, i: (n, i, 0, 0)),
        compiler_params=pltpu.CompilerParams(
            dimension_semantics=("parallel", "parallel"),
            vmem_limit_bytes=vmem_limit,
        ),
        cost_estimate=pl.CostEstimate(
            flops=0,
            transcendentals=0,
            bytes_accessed=x.size * in_isz + (N * Ho * Wo * s * s * C) * out_isz,
        ),
    )(x5)


def contract_nchw(x_nchw, gain=2, *, out_dtype=None):
    """Exact PyTorch Contract.forward semantics (NCHW in -> NCHW out).

    The transposes here are layout glue for the NCHW spec only; in a real NHWC
    TPU pipeline call contract_nhwc directly and skip both extra HBM passes.
    """
    out_nhwc = contract_nhwc(jnp.transpose(x_nchw, (0, 2, 3, 1)), gain=gain,
                             out_dtype=out_dtype)
    return jnp.transpose(out_nhwc, (0, 3, 1, 2))


def contract_ref_nchw(x, gain=2):
    """Pure-JAX reference reproducing the PyTorch forward exactly (NCHW)."""
    N, C, H, W = x.shape
    s = gain
    x = x.reshape(N, C, H // s, s, W // s, s)
    x = jnp.transpose(x, (0, 3, 5, 1, 2, 4))
    return x.reshape(N, C * s * s, H // s, W // s)


if __name__ == "__main__":
    k0, k1, k2 = jax.random.split(jax.random.PRNGKey(0), 3)
    gain = 2

    # 1) Lane-dense Pallas path: gain*C = 128 input lanes, gain^2*C = 256 output lanes.
    N, H, W, C = 2, 16, 16, 64
    x_nhwc = jax.random.normal(k0, (N, H, W, C), dtype=jnp.float32)
    out = jax.block_until_ready(contract_nhwc(x_nhwc, gain=gain))
    ref_nchw = contract_ref_nchw(jnp.transpose(x_nhwc, (0, 3, 1, 2)), gain=gain)
    ref = jnp.transpose(ref_nchw, (0, 2, 3, 1))
    assert out.shape == (N, H // gain, W // gain, C * gain * gain), out.shape
    assert out.dtype == x_nhwc.dtype
    assert bool(jnp.array_equal(out, ref)), "mismatch (pallas, lane-dense)"

    # 1b) Exact NCHW module semantics through the thin wrapper.
    x_nchw = jnp.transpose(x_nhwc, (0, 3, 1, 2))
    out_nchw = jax.block_until_ready(contract_nchw(x_nchw, gain=gain))
    assert bool(jnp.array_equal(out_nchw, ref_nchw)), "mismatch (nchw wrapper)"

    # 2) Fused bf16 downcast in the store (free on the idle VPU, ~25% less HBM traffic).
    out_bf16 = jax.block_until_ready(contract_nhwc(x_nhwc, gain=gain,
                                                   out_dtype=jnp.bfloat16))
    assert out_bf16.dtype == jnp.bfloat16
    assert bool(jnp.array_equal(out_bf16, ref.astype(jnp.bfloat16))), "mismatch (bf16 fuse)"

    # 3) Ragged row-tile path: Ho=9 with a forced TH=5 -> grid (1, 2) with a
    #    masked partial last tile (exercises the cdiv / ragged machinery).
    x_rag = jax.random.normal(k1, (1, 18, 16, 64), dtype=jnp.float32)
    out_rag = jax.block_until_ready(contract_nhwc(x_rag, gain=gain, row_tile=5))
    ref_rag = jnp.transpose(
        contract_ref_nchw(jnp.transpose(x_rag, (0, 3, 1, 2)), gain=gain), (0, 2, 3, 1))
    assert bool(jnp.array_equal(out_rag, ref_rag)), "mismatch (pallas, ragged tiles)"

    # 4) Tiny-C / lane-sparse case: auto-falls back to the fused XLA path.
    x_small = jax.random.normal(k2, (2, 16, 16, 4), dtype=jnp.float32)
    out_small = contract_nhwc(x_small, gain=gain)
    ref_small = jnp.transpose(
        contract_ref_nchw(jnp.transpose(x_small, (0, 3, 1, 2)), gain=gain), (0, 2, 3, 1))
    assert bool(jnp.array_equal(out_small, ref_small)), "mismatch (xla fallback, small C)"

    print("KERNEL_OK")
</pallas_src>

<mosaic_0001>
module attributes {stable_mosaic.version = 11 : i64} {
  func.func @_contract_kernel(%arg0: i32, %arg1: i32, %arg2: memref<1x8x2x8x128xf32, #tpu.memory_space<vmem>>, %arg3: memref<1x8x8x256xf32, #tpu.memory_space<vmem>>) attributes {dimension_semantics = [#tpu.dimension_semantics<parallel>, #tpu.dimension_semantics<parallel>], iteration_bounds = array<i64: 2, 1>, scalar_prefetch = 0 : i64, scratch_operands = 0 : i64, tpu.core_type = #tpu.core_type<tc>, window_params = [{transform_indices = @transform_0, window_bounds = array<i64: 1, 8, 2, 8, 128>}, {transform_indices = @transform_1, window_bounds = array<i64: 1, 8, 8, 256>}]} {
    %c0 = arith.constant 0 : index
    %c0_0 = arith.constant 0 : index
    %c0_1 = arith.constant 0 : index
    %c0_2 = arith.constant 0 : index
    %c0_3 = arith.constant 0 : index
    %0 = vector.load %arg2[%c0, %c0_0, %c0_1, %c0_2, %c0_3] : memref<1x8x2x8x128xf32, #tpu.memory_space<vmem>>, vector<1x8x1x8x128xf32>
    %1 = vector.shape_cast %0 : vector<1x8x1x8x128xf32> to vector<1x8x8x128xf32>
    %c0_4 = arith.constant 0 : index
    %c0_5 = arith.constant 0 : index
    %c0_6 = arith.constant 0 : index
    %c0_7 = arith.constant 0 : index
    %2 = vector.load %arg3[%c0_4, %c0_5, %c0_6, %c0_7] : memref<1x8x8x256xf32, #tpu.memory_space<vmem>>, vector<1x8x8x128xf32>
    tpu.vector_store %arg3[%c0_4, %c0_5, %c0_6, %c0_7], %1 {strides = array<i32>} : memref<1x8x8x256xf32, #tpu.memory_space<vmem>>, vector<1x8x8x128xf32>,
    %c0_8 = arith.constant 0 : index
    %c0_9 = arith.constant 0 : index
    %c1 = arith.constant 1 : index
    %c0_10 = arith.constant 0 : index
    %c0_11 = arith.constant 0 : index
    %3 = vector.load %arg2[%c0_8, %c0_9, %c1, %c0_10, %c0_11] : memref<1x8x2x8x128xf32, #tpu.memory_space<vmem>>, vector<1x8x1x8x128xf32>
    %4 = vector.shape_cast %3 : vector<1x8x1x8x128xf32> to vector<1x8x8x128xf32>
    %c0_12 = arith.constant 0 : index
    %c0_13 = arith.constant 0 : index
    %c0_14 = arith.constant 0 : index
    %c128 = arith.constant 128 : index
    %5 = vector.load %arg3[%c0_12, %c0_13, %c0_14, %c128] : memref<1x8x8x256xf32, #tpu.memory_space<vmem>>, vector<1x8x8x128xf32>
    tpu.vector_store %arg3[%c0_12, %c0_13, %c0_14, %c128], %4 {strides = array<i32>} : memref<1x8x8x256xf32, #tpu.memory_space<vmem>>, vector<1x8x8x128xf32>,
    return
  }
  func.func @transform_0(%arg0: i32, %arg1: i32) -> (i32, i32, i32, i32, i32) {
    %c0_i32 = arith.constant 0 : i32
    %c0_i32_0 = arith.constant 0 : i32
    %c0_i32_1 = arith.constant 0 : i32
    %c0_i32_2 = arith.constant 0 : i32
    return %arg0, %arg1, %c0_i32, %c0_i32_0, %c0_i32_1 : i32, i32, i32, i32, i32
  }
  func.func @transform_1(%arg0: i32, %arg1: i32) -> (i32, i32, i32, i32) {
    %c0_i32 = arith.constant 0 : i32
    %c0_i32_0 = arith.constant 0 : i32
    %c0_i32_1 = arith.constant 0 : i32
    return %arg0, %arg1, %c0_i32, %c0_i32_0 : i32, i32, i32, i32
  }
}

</mosaic_0001>

<bundles_post_ra>
// kernel: tpu_custom_call.1
= control target key start
LH: loop header
LB: loop body
LE: loop exit
PB: predicated region body
PF: predicated region fallthrough
CT: control target
= control target key end

     0   :  { %6 = vsyncpa [#allocation3], 0  ;;  %s726_s0 = inlined_call_operand.hbm [shape: f32[2,8,2,8,128], index: 0, kind: input, shape index: {}]   ;;  %s727_s1 = inlined_call_operand.hbm [shape: f32[2,8,8,256], index: 1, kind: output, shape index: {}]  }
   0x1   :  { %8 = vsyncpa [#allocation3 + $0x1], 0 }
   0x2   :  { %9 = vsyncpa [#allocation4], 0 }
   0x3   :  { %11 = vsyncpa [#allocation4 + $0x1], 0  ;;  %s514_s6 = smov 0   ;;  %s516_s7 = smov 0  }
   0x4   :  { %s518_s8 = smov 0   ;;  %s520_s9 = smov 0  }
   0x5   :  { %s522_s10 = smov 0   ;;  %s524_s11 = smov 0  }
   0x6 LB: > { %s293_s12 = sadd.s32 4294967295, %s496_s11   ;;  %s294_s13 = sadd.s32 4294967294, %s496_s11   ;;  %s496_s11 = sphi %s524_s11, %s17_s11   ;;  %s492_s10 = sphi %s522_s10, %s742_s10   ;;  %s488_s9 = sphi %s520_s9, %s741_s9   ;;  %s484_s8 = sphi %s518_s8, %s740_s8   ;;  %s480_s7 = sphi %s516_s7, %s739_s7   ;;  %s476_s6 = sphi %s514_s6, %s738_s6  }
   0x7   : > { %s29_s14 = sadd.s32 1, %s492_s10  ;;  %s38_s15 = sadd.s32 1, %s484_s8 }
   0x8   : > { %p31_p0 = scmp.ge.s32.totalorder %s29_s14, 2  ;;  %p45_p1 = scmp.ne.s32.totalorder %s484_s8, %s480_s7 }
   0x9   : > { %p46_p2 = scmp.eq.s32.totalorder %s496_s11, 0  ;;  %p51_p3 = scmp.ne.s32.totalorder %s480_s7, %s476_s6 }
   0xa   : > { %s744_s14 = smov (%p31_p0, %s29_s14), 0  ;;  %p52_p5 = scmp.eq.s32.totalorder %s293_s12, 0 }
   0xb   : > { %p555_p4 = por %p46_p2, %p45_p1  ;;  %s33_s17 = ssub.s32 %s492_s10, %s744_s14 }
   0xc   : > { %p77_p6 = scmp.eq.s32.totalorder %s293_s12, 1  ;;  %p36_p7 = scmp.eq.s32.totalorder %s33_s17, 0 }
   0xd   : > { %p561_p8 = por %p52_p5, %p51_p3  ;;  %p83_p10 = scmp.eq.s32.totalorder %s294_s13, 1 }
   0xe   : > { %p565_p9 = por %p77_p6, %p45_p1  ;;  %p330_p13 = scmp.lt.s32.totalorder %s496_s11, 2 }
   0xf   : > { %s570_s20 = scalar_select %p36_p7, %s484_s8, %s38_s15  }
  0x10   : > { %s731_s19 = scalar_select %p565_p9, 1, 0 }
  0x11   : > { %p572_p11 = por %p83_p10, %p51_p3  ;;  %s103_s22 = sand.u32 1, %s484_s8  }
  0x12   : > { %s297_s23 = sshll.u32 %s103_s22, 7  ;;  %s316_s24 = sshll.u32 %s492_s10, 11 }
  0x13   : > { %s732_s21 = scalar_select %p572_p11, 1, 0 }
  0x14   : > { %s583_s27 = scalar_lea.hbm %s726_s0, %s316_s24  ;;  %s107_s28 = scalar_lea.vmem [#allocation2], %s297_s23 }
  0x15   : > { %s117_s29 = sshll.u32 %s107_s28, 4  ;;  %p589_p0 = pnand %p330_p13, %p555_p4  ;;  %s585_s29 = int_to_ptr.vmem [resolvable:$true] %s117_s29 }
  0x16   : > { %s594_s2 = scalar_lea.sflag [#allocation3], %s103_s22  ;;  %s384_s3 = scalar_lea.hbm %s583_s27, 2048 }
  0x17   : > { %p385_p2 = scmp.ne.s32.totalorder %s583_s27, %s384_s3  ;;  %p386_p3 = pneg %p589_p0 }
  0x18   : > { %s389_s12 = scalar_lea.hbm %s726_s0, 4096  ;;  %p390_p4 = scmp.lt.u32.totalorder %s583_s27, %s726_s0 }
  0x19   : > { %p387_p5 = pnand %p386_p3, %p385_p2  ;;  %p391_p7 = scmp.lt.u32.totalorder %s389_s12, %s384_s3 }
  0x1a   : > { %p393_p13 = scmp.lt.u32.totalorder %s384_s3, %s583_s27 }
  0x1b   : > { %p388_p6 = pneg %p387_p5  ;;  %p392_p10 = por %p391_p7, %p390_p4 }
  0x1d   : > { %p394_p12 = por %p393_p13, %p392_p10 }
  0x1f   : > { %p395_p1 = pnand %p394_p12, %p388_p6 }
  0x21   : > { %398 = shalt.err (!%p395_p1)
}
  0x22   : > { %s399_s16 = scalar_lea.vmem %s585_s29, 2048  ;;  %s498_s17 = smov [#allocation2]  }
  0x23   : > { %p400_p2 = scmp.ne.s32.totalorder %s585_s29, %s399_s16  ;;  %s404_s22 = sshll.u32 %s498_s17, 4  ;;  %s405_s22 = int_to_ptr.vmem [resolvable:$false] %s404_s22 }
  0x24   : > { %s406_s23 = scalar_lea.vmem %s405_s22, 4096  ;;  %p407_p9 = scmp.lt.s32.totalorder %s585_s29, %s405_s22 }
  0x25   : > { %p402_p5 = pnand %p400_p2, %p386_p3  ;;  %p408_p4 = scmp.lt.s32.totalorder %s406_s23, %s399_s16 }
  0x27   : > { %p403_p11 = pneg %p402_p5  ;;  %p409_p7 = por %p408_p4, %p407_p9 }
  0x29   : > { %p410_p10 = pnand %p409_p7, %p403_p11 }
  0x2b   : > { %413 = shalt.err (!%p410_p10)
}
  0x2c   : > { %s499_s24 = smov 128   ;;  %s500_s25 = smov 8  }
  0x2d   : > { %325 = dma.hbm_to_vmem [thread:$0]  (!%p589_p0), %s583_s27, 2048, %s585_s29, %s594_s2, %s499_s24, %s499_s24, %s500_s25  }
  0x2e   : > { %p125_p12 = scmp.lt.s32.totalorder %s496_s11, 3  ;;  %p734_p1 = scmp.ge.s32.totalorder %s496_s11, 1 }
  0x30   : > { %p126_p3 = pnand %p734_p1, %p125_p12 }
  0x31   : > { %s626_s26 = sand.u32 (!%p126_p3), 1, %s480_s7  }
  0x32   : > { %129 = sbr.rel (%p126_p3) target bundleno = 85 (0x55), region = 24  ;;  %s301_s28 = sshll.u32 (!%p126_p3), %s626_s26, 7 }
  0x33   : > { %s132_s3 = scalar_lea.sflag (!%p126_p3), [#allocation3], %s626_s26  ;;  %s630_s4 = scalar_lea.vmem (!%p126_p3), [#allocation2], %s301_s28 }
  0x39   : > { %467 = dma.done.wait (%p561_p8), %s132_s3, 2048  }
  0x3a   : > { %469 = vsyncadd (%p561_p8), %s132_s3, 4294965248  ;;  %v156_v0 = vld [vmem:[%s630_s4] sm:$0xff]  ;;  %v157_v1 = vld [vmem:[%s630_s4 + $0x10] sm:$0xff]  ;;  %s317_s27 = sshll.u32 %s488_s9, 11  ;;  %s640_s29 = scalar_lea.vmem [#allocation5], %s301_s28 }
  0x3b   : > { %v158_v2 = vld [vmem:[%s630_s4 + $0x20] sm:$0xff]  ;;  %s206_s18 = sshll.u32 %s640_s29, 4  ;;  %164 = vst [vmem:[%s640_s29] sm:$0xff] %v156_v0  ;;  %165 = vst [vmem:[%s640_s29 + $0x10] sm:$0xff] %v157_v1  ;;  %v159_v3 = vld [vmem:[%s630_s4 + $0x30] sm:$0xff]  ;;  %s664_s2 = scalar_lea.hbm %s727_s1, %s317_s27  ;;  %s666_s18 = int_to_ptr.vmem [resolvable:$true] %s206_s18 }
  0x3c   : > { %166 = vst [vmem:[%s640_s29 + $0x20] sm:$0xff] %v158_v2  ;;  %v160_v4 = vld [vmem:[%s630_s4 + $0x40] sm:$0xff]  ;;  %v161_v5 = vld [vmem:[%s630_s4 + $0x50] sm:$0xff]  ;;  %167 = vst [vmem:[%s640_s29 + $0x30] sm:$0xff] %v159_v3  ;;  %s190_s5 = scalar_lea.sflag [#allocation4], %s626_s26  ;;  %s414_s12 = scalar_lea.vmem %s666_s18, 2048 }
  0x3d   : > { %168 = vst [vmem:[%s640_s29 + $0x40] sm:$0xff] %v160_v4  ;;  %169 = vst [vmem:[%s640_s29 + $0x50] sm:$0xff] %v161_v5  ;;  %v162_v6 = vld [vmem:[%s630_s4 + $0x60] sm:$0xff]  ;;  %v163_v7 = vld [vmem:[%s630_s4 + $0x70] sm:$0xff]  ;;  %p415_p8 = scmp.ne.s32.totalorder %s666_s18, %s414_s12  ;;  %p735_p9 = scmp.ne.s32.totalorder %s731_s19, 0 }
  0x3e   : > { %v303_v8 = vld [vmem:[%s630_s4 + $0x8] sm:$0xff]  ;;  %170 = vst [vmem:[%s640_s29 + $0x60] sm:$0xff] %v162_v6  ;;  %171 = vst [vmem:[%s640_s29 + $0x70] sm:$0xff] %v163_v7  ;;  %v304_v9 = vld [vmem:[%s630_s4 + $0x18] sm:$0xff]  ;;  %s501_s13 = smov [#allocation5]  }
  0x3f   : > { %181 = vst [vmem:[%s640_s29 + $0x8] sm:$0xff] %v303_v8  ;;  %v305_v10 = vld [vmem:[%s630_s4 + $0x28] sm:$0xff]  ;;  %v306_v11 = vld [vmem:[%s630_s4 + $0x38] sm:$0xff]  ;;  %182 = vst [vmem:[%s640_s29 + $0x18] sm:$0xff] %v304_v9  ;;  %p416_p11 = pnand %p415_p8, %p735_p9  ;;  %s418_s15 = sshll.u32 %s501_s13, 4  ;;  %s419_s15 = int_to_ptr.vmem [resolvable:$false] %s418_s15 }
  0x40   : > { %183 = vst [vmem:[%s640_s29 + $0x28] sm:$0xff] %v305_v10  ;;  %184 = vst [vmem:[%s640_s29 + $0x38] sm:$0xff] %v306_v11  ;;  %v307_v12 = vld [vmem:[%s630_s4 + $0x48] sm:$0xff]  ;;  %v308_v13 = vld [vmem:[%s630_s4 + $0x58] sm:$0xff]  ;;  %s420_s16 = scalar_lea.vmem %s419_s15, 4096  ;;  %p421_p6 = scmp.lt.s32.totalorder %s666_s18, %s419_s15 }
  0x41   : > { %v309_v14 = vld [vmem:[%s630_s4 + $0x68] sm:$0xff]  ;;  %185 = vst [vmem:[%s640_s29 + $0x48] sm:$0xff] %v307_v12  ;;  %186 = vst [vmem:[%s640_s29 + $0x58] sm:$0xff] %v308_v13  ;;  %v310_v15 = vld [vmem:[%s630_s4 + $0x78] sm:$0xff]  ;;  %p417_p0 = pneg %p416_p11  ;;  %p422_p13 = scmp.lt.s32.totalorder %s420_s16, %s414_s12 }
  0x42   : > { %187 = vst [vmem:[%s640_s29 + $0x68] sm:$0xff] %v309_v14  ;;  %188 = vst [vmem:[%s640_s29 + $0x78] sm:$0xff] %v310_v15 }
  0x43   : > { %p423_p2 = por %p422_p13, %p421_p6 }
  0x45   : > { %p424_p5 = pnand %p423_p2, %p417_p0 }
  0x47   : > { %427 = shalt.err (!%p424_p5)
}
  0x48   : > { %s428_s17 = scalar_lea.hbm %s664_s2, 2048  ;;  %s432_s24 = scalar_lea.hbm %s727_s1, 4096 }
  0x49   : > { %p429_p4 = scmp.ne.s32.totalorder %s664_s2, %s428_s17  ;;  %p433_p12 = scmp.lt.u32.totalorder %s664_s2, %s727_s1 }
  0x4a   : > { %p434_p1 = scmp.lt.u32.totalorder %s432_s24, %s428_s17  ;;  %p436_p8 = scmp.lt.u32.totalorder %s428_s17, %s664_s2 }
  0x4b   : > { %p430_p7 = pnand %p429_p4, %p735_p9 }
  0x4c   : > { %p435_p3 = por %p434_p1, %p433_p12 }
  0x4d   : > { %p431_p10 = pneg %p430_p7 }
  0x4e   : > { %p437_p11 = por %p436_p8, %p435_p3 }
  0x50   : > { %p438_p0 = pnand %p437_p11, %p431_p10 }
  0x52   : > { %441 = shalt.err (!%p438_p0)
}
  0x53   : > { %s502_s3 = smov 256   ;;  %s503_s4 = smov 16  }
  0x54   : > { %320 = dma.vmem_to_hbm [thread:$0]  (%p735_p9), %s666_s18, 2048, %s664_s2, %s190_s5, %s502_s3, %s502_s3, %s503_s4  }
  0x55 PF: > { %s221_s27 = sand.u32 1, %s476_s6   ;;  %p736_p6 = scmp.ne.s32.totalorder %s732_s21, 0 }
  0x56   : > { %p737_p13 = scmp.ge.s32.totalorder %s496_s11, 2  ;;  %s222_s29 = scalar_lea.sflag [#allocation4], %s221_s27 }
  0x58   : > { %p327_p2 = pnand %p737_p13, %p736_p6 }
  0x5a   : > { %471 = dma.done.wait (!%p327_p2), %s222_s29, 2048  }
  0x5b   : > { %473 = vsyncadd (!%p327_p2), %s222_s29, 4294965248  ;;  %s17_s11 = sadd.s32 1, %s496_s11   ;;  %s738_s6 = smov %s480_s7 }
  0x5c   : > { %p14_p5 = scmp.ge.s32.totalorder %s17_s11, 4   ;;  %s739_s7 = smov %s484_s8 }
  0x5d   : > { %s740_s8 = smov %s570_s20  ;;  %s741_s9 = smov %s492_s10 }
  0x5e   : > { %s742_s10 = smov %s744_s14  ;;  %16 = sbr.rel (!%p14_p5) target bundleno = 6 (0x6), region = 70 }
  0x65   :  { %227 = vsyncpa [#allocation3], 1 }
  0x66   :  { %229 = vsyncpa [#allocation3 + $0x1], 1 }
  0x67   :  { %230 = vsyncpa [#allocation4], 1 }
  0x68   :  { %232 = vsyncpa [#allocation4 + $0x1], 1 }

</bundles_post_ra>
